<compile_context>
chip_gen: v6e
topology: v6e:2x2x1
jax: 0.10.0
libtpu: 0.0.40
codegen_flags: <defaults>
</compile_context>

<pallas_src>
import functools

import jax
import jax.numpy as jnp
from jax.experimental import pallas as pl
from jax.experimental.pallas import tpu as pltpu

_LANES = 128  # lane width of the per-row partial-sum accumulators


def _dice_partial_kernel(x_ref, t_ref, out_ref, *, mode, threshold, hw_total,
                         block_hw, n_per_split, needs_mask):
    """Accumulate partial sums for one (row-group, hw-split, hw-tile) grid cell.

    x_ref, t_ref : (row_tile, block_hw) tiles of the (B*C, HW) inputs.
    out_ref      : (1, 3, row_tile, 128) lane/sublane-dense accumulator; the
                   same output block is revisited for every hw tile of a given
                   (row-group, hw-split) pair (accumulator pattern).
                   slot 0: sum(x*t)
                   slot 1: sum(x^2) (soft) / sum(x) (hard)
                   slot 2: sum(t^2) (soft) / sum(t) (hard)
    """
    s = pl.program_id(1)
    j = pl.program_id(2)

    @pl.when(j == 0)
    def _():
        out_ref[...] = jnp.zeros_like(out_ref)

    row_tile = x_ref.shape[0]
    nchunks = block_hw // _LANES
    tile_start = (s * n_per_split + j) * block_hw  # element offset into HW

    def accumulate(masked):
        def chunk(k, carry):
            xt, xs, ts = carry
            off = pl.multiple_of(k * _LANES, _LANES)
            x = x_ref[:, pl.ds(off, _LANES)].astype(jnp.float32)
            t = t_ref[:, pl.ds(off, _LANES)].astype(jnp.float32)
            if mode == 'hard':
                x = jnp.ceil(x - threshold)
            if masked:
                # Mask AFTER the hard transform so out-of-range lanes
                # contribute 0 for any threshold value.
                lane = jax.lax.broadcasted_iota(jnp.int32, x.shape, 1)
                valid = lane < (hw_total - tile_start - off)
                x = jnp.where(valid, x, 0.0)
                t = jnp.where(valid, t, 0.0)
            xt = xt + x * t
            if mode == 'soft':
                xs = xs + x * x
                ts = ts + t * t
            else:
                xs = xs + x
                ts = ts + t
            return xt, xs, ts

        zero = jnp.zeros((row_tile, _LANES), jnp.float32)
        xt, xs, ts = jax.lax.fori_loop(0, nchunks, chunk, (zero, zero, zero),
                                       unroll=min(8, nchunks))
        out_ref[0, 0] += xt
        out_ref[0, 1] += xs
        out_ref[0, 2] += ts

    if needs_mask:
        at_boundary = tile_start + block_hw > hw_total

        @pl.when(jnp.logical_not(at_boundary))
        def _():
            accumulate(masked=False)

        @pl.when(at_boundary)
        def _():
            accumulate(masked=True)
    else:
        accumulate(masked=False)


def _vmem_config():
    """(input-pipeline VMEM budget bytes, vmem_limit_bytes) per generation."""
    kind = ""
    try:
        kind = jax.devices()[0].device_kind.lower()
    except Exception:
        pass
    if "v6" in kind:                                  # v6e: 128 MiB physical
        return 24 << 20, 64 << 20
    if "v5 lite" in kind or "v5e" in kind:            # v5e: 128 MiB physical
        return 20 << 20, 48 << 20
    # v7x (64 MiB physical per TC) and unknown chips: conservative.
    return 16 << 20, 40 << 20


def _pick_row_tile(rows, min_itemsize):
    """Sublane-dense row tile: 8 rows per f32 vreg, 16 for bf16, 32 for int8."""
    base = 8 * max(1, 4 // max(min_itemsize, 1))
    for r in (base, 8):
        if r <= rows and rows % r == 0:
            return r
    return rows  # full extent is always a legal block dim


def _pick_block_hw(row_tile, hw, itemsize, budget_bytes):
    """Largest lane tile (multiple of 128) s.t. 2 inputs x 2 pipeline buffers
    of (row_tile, block_hw) fit the generation-aware VMEM budget."""
    per_lane = 2 * 2 * row_tile * itemsize
    max_lanes = max(_LANES, budget_bytes // max(per_lane, 1))
    hw_padded = pl.cdiv(hw, _LANES) * _LANES
    block = min(int(max_lanes), int(hw_padded))
    return max(_LANES, (block // _LANES) * _LANES)


def dice_loss(x, target, *, mode='soft', average='batch',
              channel_reduction='mean', threshold=0.5, epsilon=1e-5,
              block_hw=None):
    """DiceLoss forward. x, target: NCHW arrays of equal shape (any float/int
    dtype; accumulation is always in float32)."""
    assert x.shape == target.shape
    if average != 'batch':
        # TODO(synk): average='sample' path not implemented (module default is 'batch').
        raise NotImplementedError("only average='batch' is implemented")
    if mode not in ('soft', 'hard'):
        raise ValueError(f'Invalid mode {mode}')
    if channel_reduction not in ('mean', 'sum'):
        raise ValueError(f'Invalid channel_reduction method {channel_reduction}')

    B, C, H, W = x.shape
    HW = H * W
    rows = B * C

    # Free, contiguous flatten — no HBM transpose or pad passes.
    x2 = x.reshape(rows, HW)
    t2 = target.reshape(rows, HW)

    x_item = jnp.dtype(x.dtype).itemsize
    t_item = jnp.dtype(target.dtype).itemsize
    budget, vmem_limit = _vmem_config()

    row_tile = _pick_row_tile(rows, min(x_item, t_item))
    if block_hw is None:
        block_hw = _pick_block_hw(row_tile, HW, max(x_item, t_item), budget)
    else:
        # Validate/round a user-supplied tile to the 128-lane constraint.
        block_hw = max(_LANES, pl.cdiv(int(block_hw), _LANES) * _LANES)
        block_hw = min(block_hw, pl.cdiv(HW, _LANES) * _LANES)

    n_row_groups = rows // row_tile
    n_hw = pl.cdiv(HW, block_hw)
    # Give the megacore a second parallel axis when row groups alone cannot
    # feed both TensorCores (v7x); harmless elsewhere.
    n_split = 2 if (n_row_groups < 2 and n_hw >= 2) else 1
    n_per_split = pl.cdiv(n_hw, n_split)
    needs_mask = (n_split * n_per_split * block_hw) != HW

    def in_map(i, s, j):
        # Clamp so fully-out-of-range tiles (from the hw split) stay in
        # bounds; the kernel masks their contribution to zero.
        return (i, jnp.minimum(s * n_per_split + j, n_hw - 1))

    kernel = functools.partial(
        _dice_partial_kernel, mode=mode, threshold=threshold, hw_total=HW,
        block_hw=block_hw, n_per_split=n_per_split, needs_mask=needs_mask)

    cost = pl.CostEstimate(
        flops=6 * rows * HW,
        transcendentals=0,
        bytes_accessed=rows * HW * (x_item + t_item)
        + n_split * 3 * rows * _LANES * 4)

    partials = pl.pallas_call(
        kernel,
        out_shape=jax.ShapeDtypeStruct((n_split, 3, rows, _LANES), jnp.float32),
        grid_spec=pltpu.PrefetchScalarGridSpec(
            num_scalar_prefetch=0,
            grid=(n_row_groups, n_split, n_per_split),
            in_specs=[
                pl.BlockSpec((row_tile, block_hw), in_map),
                pl.BlockSpec((row_tile, block_hw), in_map),
            ],
            out_specs=pl.BlockSpec((1, 3, row_tile, _LANES),
                                   lambda i, s, j: (s, 0, i, 0)),
        ),
        compiler_params=pltpu.CompilerParams(
            dimension_semantics=("parallel", "parallel", "arbitrary"),
            vmem_limit_bytes=vmem_limit),
        cost_estimate=cost,
    )(x2, t2)

    # Tiny finalize in plain JAX: (n_split, 3, rows, 128) -> per-channel sums.
    sums = jnp.sum(partials, axis=(0, 3)).reshape(3, B, C).sum(axis=1)  # (3, C)
    numerator = 2.0 * sums[0] + epsilon
    denominator = sums[1] + sums[2] + epsilon
    dice = jnp.sum(numerator / denominator)
    if channel_reduction == 'mean':
        dice = dice / C
    return 1.0 - dice


def _dice_loss_ref(x, target, *, mode='soft', channel_reduction='mean',
                   threshold=0.5, epsilon=1e-5):
    """Pure-JAX reference mirroring the torch module (average='batch')."""
    B, C, H, W = x.shape
    xi = x.reshape(B, C, -1).astype(jnp.float32)
    ti = target.reshape(B, C, -1).astype(jnp.float32)
    if mode == 'hard':
        xi = jnp.ceil(xi - threshold)
    num = 2.0 * jnp.sum(xi * ti, axis=(0, 2)) + epsilon
    if mode == 'soft':
        den = jnp.sum(xi * xi, axis=(0, 2)) + jnp.sum(ti * ti, axis=(0, 2)) + epsilon
    else:
        den = jnp.sum(xi, axis=(0, 2)) + jnp.sum(ti, axis=(0, 2)) + epsilon
    dice = jnp.sum(num / den)
    if channel_reduction == 'mean':
        dice = dice / C
    return 1.0 - dice


if __name__ == "__main__":
    key = jax.random.PRNGKey(0)
    kx, kt, kx2, kt2, kx3, kt3 = jax.random.split(key, 6)

    # Case 1: module-default config (soft), B=2, C=4, 16x16 spatial.
    B, C, H, W = 2, 4, 16, 16
    x = jax.nn.sigmoid(jax.random.normal(kx, (B, C, H, W), dtype=jnp.float32))
    target = (jax.random.uniform(kt, (B, C, H, W)) > 0.5).astype(jnp.float32)
    loss = jax.block_until_ready(dice_loss(x, target))
    ref = _dice_loss_ref(x, target)
    assert jnp.allclose(loss, ref, rtol=1e-5, atol=1e-6), (loss, ref)

    # Case 2: hard mode + ragged spatial extent + rows not a multiple of 8
    # (exercises the masked boundary path and the full-extent row fallback).
    B2, C2, H2, W2 = 1, 3, 5, 7
    x2 = jax.nn.sigmoid(jax.random.normal(kx2, (B2, C2, H2, W2), dtype=jnp.float32))
    t2 = (jax.random.uniform(kt2, (B2, C2, H2, W2)) > 0.5).astype(jnp.float32)
    loss2 = jax.block_until_ready(dice_loss(x2, t2, mode='hard'))
    ref2 = _dice_loss_ref(x2, t2, mode='hard')
    assert jnp.allclose(loss2, ref2, rtol=1e-5, atol=1e-6), (loss2, ref2)

    # Case 3: forced small tile -> multi-tile hw axis with a 2-way parallel
    # split and a fully out-of-range trailing tile (exercises clamp + mask +
    # the unmasked interior fast path), channel_reduction='sum'.
    B3, C3, H3, W3 = 1, 8, 56, 32            # HW = 1792 = 7 * 256
    x3 = jax.nn.sigmoid(jax.random.normal(kx3, (B3, C3, H3, W3), dtype=jnp.float32))
    t3 = (jax.random.uniform(kt3, (B3, C3, H3, W3)) > 0.5).astype(jnp.float32)
    loss3 = jax.block_until_ready(
        dice_loss(x3, t3, channel_reduction='sum', block_hw=256))
    ref3 = _dice_loss_ref(x3, t3, channel_reduction='sum')
    assert jnp.allclose(loss3, ref3, rtol=1e-5, atol=1e-6), (loss3, ref3)

    print("KERNEL_OK")
</pallas_src>

<mosaic_0001>
module attributes {stable_mosaic.version = 11 : i64} {
  func.func @_dice_partial_kernel(%arg0: i32, %arg1: i32, %arg2: i32, %arg3: memref<8x256xf32, #tpu.memory_space<vmem>>, %arg4: memref<8x256xf32, #tpu.memory_space<vmem>>, %arg5: memref<1x3x8x128xf32, #tpu.memory_space<vmem>>) attributes {dimension_semantics = [#tpu.dimension_semantics<parallel>, #tpu.dimension_semantics<parallel>, #tpu.dimension_semantics<arbitrary>], iteration_bounds = array<i64: 1, 1, 1>, scalar_prefetch = 0 : i64, scratch_operands = 0 : i64, tpu.core_type = #tpu.core_type<tc>, window_params = [{transform_indices = @transform_0, window_bounds = array<i64: 8, 256>}, {transform_indices = @transform_1, window_bounds = array<i64: 8, 256>}, {transform_indices = @transform_2, window_bounds = array<i64: 1, 3, 8, 128>}]} {
    %c0_i32 = arith.constant 0 : i32
    %0 = arith.cmpi eq, %arg2, %c0_i32 : i32
    %1 = arith.extui %0 : i1 to i32
    %c0_i32_0 = arith.constant 0 : i32
    %2 = arith.cmpi ne, %1, %c0_i32_0 : i32
    scf.if %2 {
      %cst_28 = arith.constant 0.000000e+00 : f32
      %46 = vector.broadcast %cst_28 : f32 to vector<1x3x8x128xf32>
      %c0_29 = arith.constant 0 : index
      %c0_30 = arith.constant 0 : index
      %c0_31 = arith.constant 0 : index
      %c0_32 = arith.constant 0 : index
      %47 = vector.load %arg5[%c0_29, %c0_30, %c0_31, %c0_32] : memref<1x3x8x128xf32, #tpu.memory_space<vmem>>, vector<1x3x8x128xf32>
      tpu.vector_store %arg5[%c0_29, %c0_30, %c0_31, %c0_32], %46 {strides = array<i32>} : memref<1x3x8x128xf32, #tpu.memory_space<vmem>>, vector<1x3x8x128xf32>,
    } else {
    }
    %cst = arith.constant 0.000000e+00 : f32
    %3 = vector.broadcast %cst : f32 to vector<8x128xf32>
    %c0_i32_1 = arith.constant 0 : i32
    %c128_i32 = arith.constant 128 : i32
    %4 = arith.muli %c0_i32_1, %c128_i32 : i32
    %5 = tpu.assume_multiple %4, 128 : i32
    %c0 = arith.constant 0 : index
    %6 = arith.index_cast %5 : i32 to index
    %7 = vector.load %arg3[%c0, %6] : memref<8x256xf32, #tpu.memory_space<vmem>>, vector<8x128xf32>
    %c0_2 = arith.constant 0 : index
    %8 = arith.index_cast %5 : i32 to index
    %9 = vector.load %arg4[%c0_2, %8] : memref<8x256xf32, #tpu.memory_space<vmem>>, vector<8x128xf32>
    %10 = arith.mulf %7, %9 : vector<8x128xf32>
    %11 = arith.addf %3, %10 : vector<8x128xf32>
    %12 = arith.mulf %7, %7 : vector<8x128xf32>
    %13 = arith.addf %3, %12 : vector<8x128xf32>
    %14 = arith.mulf %9, %9 : vector<8x128xf32>
    %15 = arith.addf %3, %14 : vector<8x128xf32>
    %c1_i32 = arith.constant 1 : i32
    %c128_i32_3 = arith.constant 128 : i32
    %16 = arith.muli %c1_i32, %c128_i32_3 : i32
    %17 = tpu.assume_multiple %16, 128 : i32
    %c0_4 = arith.constant 0 : index
    %18 = arith.index_cast %17 : i32 to index
    %19 = vector.load %arg3[%c0_4, %18] : memref<8x256xf32, #tpu.memory_space<vmem>>, vector<8x128xf32>
    %c0_5 = arith.constant 0 : index
    %20 = arith.index_cast %17 : i32 to index
    %21 = vector.load %arg4[%c0_5, %20] : memref<8x256xf32, #tpu.memory_space<vmem>>, vector<8x128xf32>
    %22 = arith.mulf %19, %21 : vector<8x128xf32>
    %23 = arith.addf %11, %22 : vector<8x128xf32>
    %24 = arith.mulf %19, %19 : vector<8x128xf32>
    %25 = arith.addf %13, %24 : vector<8x128xf32>
    %26 = arith.mulf %21, %21 : vector<8x128xf32>
    %27 = arith.addf %15, %26 : vector<8x128xf32>
    %c2_i32 = arith.constant 2 : i32
    %c0_6 = arith.constant 0 : index
    %c0_7 = arith.constant 0 : index
    %c0_8 = arith.constant 0 : index
    %c0_9 = arith.constant 0 : index
    %28 = vector.load %arg5[%c0_6, %c0_7, %c0_8, %c0_9] : memref<1x3x8x128xf32, #tpu.memory_space<vmem>>, vector<1x1x8x128xf32>
    %29 = vector.shape_cast %28 : vector<1x1x8x128xf32> to vector<8x128xf32>
    %30 = arith.addf %29, %23 : vector<8x128xf32>
    %c0_10 = arith.constant 0 : index
    %c0_11 = arith.constant 0 : index
    %c0_12 = arith.constant 0 : index
    %c0_13 = arith.constant 0 : index
    %31 = vector.load %arg5[%c0_10, %c0_11, %c0_12, %c0_13] : memref<1x3x8x128xf32, #tpu.memory_space<vmem>>, vector<1x1x8x128xf32>
    %32 = vector.shape_cast %31 : vector<1x1x8x128xf32> to vector<8x128xf32>
    %33 = vector.shape_cast %30 : vector<8x128xf32> to vector<1x1x8x128xf32>
    tpu.vector_store %arg5[%c0_10, %c0_11, %c0_12, %c0_13], %33 {strides = array<i32>} : memref<1x3x8x128xf32, #tpu.memory_space<vmem>>, vector<1x1x8x128xf32>,
    %c0_14 = arith.constant 0 : index
    %c1 = arith.constant 1 : index
    %c0_15 = arith.constant 0 : index
    %c0_16 = arith.constant 0 : index
    %34 = vector.load %arg5[%c0_14, %c1, %c0_15, %c0_16] : memref<1x3x8x128xf32, #tpu.memory_space<vmem>>, vector<1x1x8x128xf32>
    %35 = vector.shape_cast %34 : vector<1x1x8x128xf32> to vector<8x128xf32>
    %36 = arith.addf %35, %25 : vector<8x128xf32>
    %c0_17 = arith.constant 0 : index
    %c1_18 = arith.constant 1 : index
    %c0_19 = arith.constant 0 : index
    %c0_20 = arith.constant 0 : index
    %37 = vector.load %arg5[%c0_17, %c1_18, %c0_19, %c0_20] : memref<1x3x8x128xf32, #tpu.memory_space<vmem>>, vector<1x1x8x128xf32>
    %38 = vector.shape_cast %37 : vector<1x1x8x128xf32> to vector<8x128xf32>
    %39 = vector.shape_cast %36 : vector<8x128xf32> to vector<1x1x8x128xf32>
    tpu.vector_store %arg5[%c0_17, %c1_18, %c0_19, %c0_20], %39 {strides = array<i32>} : memref<1x3x8x128xf32, #tpu.memory_space<vmem>>, vector<1x1x8x128xf32>,
    %c0_21 = arith.constant 0 : index
    %c2 = arith.constant 2 : index
    %c0_22 = arith.constant 0 : index
    %c0_23 = arith.constant 0 : index
    %40 = vector.load %arg5[%c0_21, %c2, %c0_22, %c0_23] : memref<1x3x8x128xf32, #tpu.memory_space<vmem>>, vector<1x1x8x128xf32>
    %41 = vector.shape_cast %40 : vector<1x1x8x128xf32> to vector<8x128xf32>
    %42 = arith.addf %41, %27 : vector<8x128xf32>
    %c0_24 = arith.constant 0 : index
    %c2_25 = arith.constant 2 : index
    %c0_26 = arith.constant 0 : index
    %c0_27 = arith.constant 0 : index
    %43 = vector.load %arg5[%c0_24, %c2_25, %c0_26, %c0_27] : memref<1x3x8x128xf32, #tpu.memory_space<vmem>>, vector<1x1x8x128xf32>
    %44 = vector.shape_cast %43 : vector<1x1x8x128xf32> to vector<8x128xf32>
    %45 = vector.shape_cast %42 : vector<8x128xf32> to vector<1x1x8x128xf32>
    tpu.vector_store %arg5[%c0_24, %c2_25, %c0_26, %c0_27], %45 {strides = array<i32>} : memref<1x3x8x128xf32, #tpu.memory_space<vmem>>, vector<1x1x8x128xf32>,
    return
  }
  func.func @transform_0(%arg0: i32, %arg1: i32, %arg2: i32) -> (i32, i32) {
    %c1_i32 = arith.constant 1 : i32
    %0 = arith.muli %arg1, %c1_i32 : i32
    %1 = arith.addi %0, %arg2 : i32
    %c0_i32 = arith.constant 0 : i32
    %2 = arith.minsi %1, %c0_i32 : i32
    %c0_i32_0 = arith.constant 0 : i32
    return %arg0, %2 : i32, i32
  }
  func.func @transform_1(%arg0: i32, %arg1: i32, %arg2: i32) -> (i32, i32) {
    %c1_i32 = arith.constant 1 : i32
    %0 = arith.muli %arg1, %c1_i32 : i32
    %1 = arith.addi %0, %arg2 : i32
    %c0_i32 = arith.constant 0 : i32
    %2 = arith.minsi %1, %c0_i32 : i32
    %c0_i32_0 = arith.constant 0 : i32
    return %arg0, %2 : i32, i32
  }
  func.func @transform_2(%arg0: i32, %arg1: i32, %arg2: i32) -> (i32, i32, i32, i32) {
    %c0_i32 = arith.constant 0 : i32
    %c0_i32_0 = arith.constant 0 : i32
    %c0_i32_1 = arith.constant 0 : i32
    return %arg1, %c0_i32, %arg0, %c0_i32_0 : i32, i32, i32, i32
  }
}

</mosaic_0001>

<bundles_post_ra>
// kernel: tpu_custom_call.1
= control target key start
LH: loop header
LB: loop body
LE: loop exit
PB: predicated region body
PF: predicated region fallthrough
CT: control target
= control target key end

     0   :  { %7 = vsyncpa [#allocation3], 0  ;;  %s215_s0 = inlined_call_operand.hbm [shape: f32[8,256], index: 0, kind: input, shape index: {}]   ;;  %s216_s1 = inlined_call_operand.hbm [shape: f32[8,256], index: 1, kind: input, shape index: {}]   ;;  %s217_s2 = inlined_call_operand.hbm [shape: f32[1,3,8,128], index: 2, kind: output, shape index: {}]  }
   0x1   :  { %8 = vsyncpa [#allocation6], 0 }
   0x2   :  { %9 = vsyncpa [#allocation4], 0  ;;  %s186_s9 = smov [#allocation2]   ;;  %s187_s11 = smov [#allocation5]  }
   0x3   :  { %s22_s10 = sshll.u32 %s186_s9, 4  ;;  %s38_s12 = sshll.u32 %s187_s11, 4  ;;  %s23_s10 = int_to_ptr.vmem [resolvable:$true] %s22_s10  ;;  %s39_s12 = int_to_ptr.vmem [resolvable:$true] %s38_s12 }
   0x4   :  { %s128_s13 = scalar_lea.vmem %s23_s10, 256  ;;  %p133_p1 = scmp.lt.s32.totalorder %s23_s10, %s23_s10 }
   0x5   :  { %p129_p0 = scmp.ne.s32.totalorder %s23_s10, %s128_s13  ;;  %p134_p2 = scmp.lt.s32.totalorder %s128_s13, %s128_s13 }
   0x7   :  { %p135_p3 = por %p134_p2, %p133_p1 }
   0x9   :  { %p136_p4 = pnand %p135_p3, %p129_p0 }
   0xb   :  { %139 = shalt.err (!%p136_p4)
}
   0xc   :  { %25 = dma.hbm_to_vmem [thread:$0]  %s215_s0, 256, %s23_s10, [#allocation3]  }
   0xd   :  { %s148_s16 = scalar_lea.vmem %s39_s12, 256  ;;  %p153_p6 = scmp.lt.s32.totalorder %s39_s12, %s39_s12 }
   0xe   :  { %p149_p5 = scmp.ne.s32.totalorder %s39_s12, %s148_s16  ;;  %p154_p7 = scmp.lt.s32.totalorder %s148_s16, %s148_s16 }
  0x10   :  { %p155_p8 = por %p154_p7, %p153_p6 }
  0x12   :  { %p156_p9 = pnand %p155_p8, %p149_p5 }
  0x14   :  { %159 = shalt.err (!%p156_p9)
}
  0x15   :  { %41 = dma.hbm_to_vmem [thread:$0]  %s216_s1, 256, %s39_s12, [#allocation6]  }
  0x16   :  { %180 = dma.done.wait [#allocation3], 256  }
  0x17   :  { %181 = vsyncadd [#allocation3], 4294967040 }
  0x18   :  { %182 = dma.done.wait [#allocation6], 256  }
  0x19   :  { %183 = vsyncadd [#allocation6], 4294967040  ;;  %v63_v0 = vld [vmem:[#allocation2] sm:$0xff]  ;;  %v64_v1 = vld [vmem:[#allocation5] sm:$0xff]  ;;  %s188_s0 = smov [#allocation7]  }
  0x1a   :  { %v72_v2 = vld [vmem:[#allocation2 + $0x8] sm:$0xff]  ;;  %v65_v3 = vmul.f32 %v64_v1, %v63_v0  ;;  %v74_v4 = vld [vmem:[#allocation5 + $0x8] sm:$0xff]  ;;  %v67_v5 = vmul.f32 %v63_v0, %v63_v0  ;;  %v69_v7 = vmul.f32 %v64_v1, %v64_v1  ;;  %s97_s19 = sshll.u32 %s188_s0, 4  ;;  %s98_s19 = int_to_ptr.vmem [resolvable:$true] %s97_s19 }
  0x1b   :  { %v77_v6 = vmul.f32 %v72_v2, %v72_v2  ;;  %v75_v8 = vmul.f32 %v74_v4, %v72_v2  ;;  %v79_v9 = vmul.f32 %v74_v4, %v74_v4  ;;  %s160_s1 = scalar_lea.vmem %s98_s19, 384  ;;  %p165_p11 = scmp.lt.s32.totalorder %s98_s19, %s98_s19 }
  0x1c   :  { %p161_p10 = scmp.ne.s32.totalorder %s98_s19, %s160_s1  ;;  %p166_p12 = scmp.lt.s32.totalorder %s160_s1, %s160_s1 }
  0x1d   :  { %v78_v10 = vadd.f32 %v77_v6, %v67_v5  ;;  %v76_v11 = vadd.f32 %v75_v8, %v65_v3  ;;  %v80_v12 = vadd.f32 %v79_v9, %v69_v7 }
  0x1e   :  { %p167_p13 = por %p166_p12, %p165_p11 }
  0x1f   :  { %87 = vst [vmem:[#allocation7 + $0x8] sm:$0xff] %v78_v10  ;;  %83 = vst [vmem:[#allocation7] sm:$0xff] %v76_v11 }
  0x20   :  { %91 = vst [vmem:[#allocation7 + $0x10] sm:$0xff] %v80_v12  ;;  %p168_p0 = pnand %p167_p13, %p161_p10 }
  0x22   :  { %171 = shalt.err (!%p168_p0)
}
  0x23   :  { %s189_s20 = smov 128   ;;  %s190_s21 = smov 8  }
  0x24   :  { %103 = dma.vmem_to_hbm [thread:$0]  %s98_s19, 384, %s217_s2, [#allocation4], %s189_s20, %s189_s20, %s190_s21  }
  0x25   :  { %184 = dma.done.wait [#allocation4], 384  }
  0x26   :  { %185 = vsyncadd [#allocation4], 4294966912 }
  0x27   :  { %107 = vsyncpa [#allocation3], 1 }
  0x28   :  { %108 = vsyncpa [#allocation6], 1 }
  0x29   :  { %109 = vsyncpa [#allocation4], 1 }

</bundles_post_ra>
